<compile_context>
chip_gen: v5e
topology: v5e:2x2
jax: 0.10.0
libtpu: 0.0.40
codegen_flags: <defaults>
</compile_context>

<pallas_src>
import jax
import jax.numpy as jnp
from jax import lax
from jax.experimental import pallas as pl
from jax.experimental.pallas import tpu as pltpu


def _frame_nce_kernel(ctx_ref, qry_ref, out_ref, x_acc, nom_acc):
    """One K-slice of the NCE loss.

    ctx_ref/qry_ref : [B, tk] slices of contexts / queries (native dtype).
    out_ref         : [1, 1] f32 loss (written on the last K step only).
    x_acc           : [B, B] f32 VMEM accumulator for C @ Q^T.
    nom_acc         : [1, 1] f32 VMEM accumulator for sum(C * Q) == trace(C @ Q^T).
    """
    k = pl.program_id(0)
    nk = pl.num_programs(0)

    @pl.when(k == 0)
    def _init():
        x_acc[...] = jnp.zeros_like(x_acc)
        nom_acc[...] = jnp.zeros_like(nom_acc)

    c = ctx_ref[...]          # [B, tk] — fed straight to the MXU (no upcast)
    q = qry_ref[...]          # [B, tk]

    # x += C_k @ Q_k^T : contract over the last dim of both operands so no
    # materialized transpose of q is needed.
    x_acc[...] += lax.dot_general(
        c, q,
        dimension_numbers=(((1,), (1,)), ((), ())),
        preferred_element_type=jnp.float32)

    # mean(nominator) == trace(C @ Q^T) / B == sum(C ⊙ Q) / B:
    # accumulate the running elementwise-product sum (no eye mask, no O(B^2) work).
    nom_acc[...] += jnp.sum(
        c.astype(jnp.float32) * q.astype(jnp.float32), keepdims=True)

    @pl.when(k == nk - 1)
    def _epilogue():
        x = x_acc[...]                                     # [B, B] f32
        b = x.shape[0]

        # denominator_i = logsumexp(concat(x[i, :], x[:, i]))
        # computed without concat or a full [B,B] transpose.
        row_max = jnp.max(x, axis=1, keepdims=True)        # [B, 1]
        col_max = jnp.max(x, axis=0, keepdims=True)        # [1, B]
        m = jnp.maximum(row_max, col_max.T)                # [B, 1]

        row_sum = jnp.sum(jnp.exp(x - m), axis=1, keepdims=True)    # [B, 1]
        col_sum = jnp.sum(jnp.exp(x - m.T), axis=0, keepdims=True)  # [1, B]
        denom = jnp.log(row_sum + col_sum.T) + m                    # [B, 1]

        # reduction='mean': mean(denominator) - mean(nominator), kept 2-D throughout.
        out_ref[...] = jnp.mean(denom, keepdims=True) - nom_acc[...] * (1.0 / b)


def _pick_tk(d):
    """Largest convenient K-tile that divides D (multiples of 128 preferred)."""
    for tk in (512, 256, 128):
        if d % tk == 0:
            return tk
    return d


def frame_nce(contexts, queries):
    """contexts: [B, D], queries: [B, D]. Returns scalar mean NCE loss (f32)."""
    B, D = contexts.shape
    assert queries.shape == (B, D)

    tk = _pick_tk(D)
    nk = D // tk

    # NOTE: for large B (multi-thousand), x_acc (B*B*4 bytes) should additionally be
    # row-tiled with a "parallel" grid axis (megacore on v7x) and tk sized against the
    # 64 MiB v7x VMEM budget; for these shapes the default scoped VMEM limit is ample.
    out = pl.pallas_call(
        _frame_nce_kernel,
        out_shape=jax.ShapeDtypeStruct((1, 1), jnp.float32),
        grid_spec=pltpu.PrefetchScalarGridSpec(
            num_scalar_prefetch=0,
            grid=(nk,),
            in_specs=[
                pl.BlockSpec((B, tk), lambda k: (0, k)),
                pl.BlockSpec((B, tk), lambda k: (0, k)),
            ],
            out_specs=pl.BlockSpec((1, 1), lambda k: (0, 0)),
            scratch_shapes=[
                pltpu.VMEM((B, B), jnp.float32),   # similarity accumulator
                pltpu.VMEM((1, 1), jnp.float32),   # trace / nominator accumulator
            ],
        ),
        compiler_params=pltpu.CompilerParams(
            dimension_semantics=("arbitrary",)),   # K is a reduction axis
    )(contexts, queries)
    return out[0, 0]


def _frame_nce_ref(contexts, queries):
    """Pure-JAX reference mirroring the torch forward (reduction='mean')."""
    x = jnp.matmul(contexts.astype(jnp.float32), queries.astype(jnp.float32).T)
    B = x.shape[0]
    x3 = x.reshape(B, B, -1)
    nom = (x3 * jnp.eye(B, dtype=jnp.float32)[:, :, None]).sum(axis=1)
    nom = jax.scipy.special.logsumexp(nom, axis=1)
    den = jnp.concatenate([x3, jnp.transpose(x3, (1, 0, 2))], axis=1).reshape(B, -1)
    den = jax.scipy.special.logsumexp(den, axis=1)
    return jnp.mean(den - nom)


if __name__ == "__main__":
    B, D = 8, 256   # small shapes; D=256 with tk=128 exercises the K-tiled accumulation
    key = jax.random.PRNGKey(0)
    kc, kq = jax.random.split(key)
    contexts = jax.random.normal(kc, (B, D), dtype=jnp.float32)
    queries = jax.random.normal(kq, (B, D), dtype=jnp.float32)

    loss = jax.block_until_ready(frame_nce(contexts, queries))
    ref = jax.block_until_ready(_frame_nce_ref(contexts, queries))
    assert jnp.allclose(loss, ref, atol=1e-4, rtol=1e-4), (loss, ref)

    print("KERNEL_OK")
</pallas_src>

<mosaic_0001>
module attributes {stable_mosaic.version = 11 : i64} {
  func.func @_frame_nce_kernel(%arg0: i32, %arg1: memref<8x256xf32, #tpu.memory_space<vmem>>, %arg2: memref<8x256xf32, #tpu.memory_space<vmem>>, %arg3: memref<1x1xf32, #tpu.memory_space<vmem>>, %arg4: memref<8x8xf32, #tpu.memory_space<vmem>>, %arg5: memref<1x1xf32, #tpu.memory_space<vmem>>) attributes {dimension_semantics = [#tpu.dimension_semantics<arbitrary>], iteration_bounds = array<i64: 1>, scalar_prefetch = 0 : i64, scratch_operands = 2 : i64, tpu.core_type = #tpu.core_type<tc>, window_params = [{transform_indices = @transform_0, window_bounds = array<i64: 8, 256>}, {transform_indices = @transform_1, window_bounds = array<i64: 8, 256>}, {pipeline_mode = #tpu.pipeline_mode<synchronous>, transform_indices = @transform_2, window_bounds = array<i64: 1, 1>}]} {
    %c0_i32 = arith.constant 0 : i32
    %0 = arith.cmpi eq, %arg0, %c0_i32 : i32
    %1 = arith.extui %0 : i1 to i32
    %c0_i32_0 = arith.constant 0 : i32
    %2 = arith.cmpi ne, %1, %c0_i32_0 : i32
    scf.if %2 {
      %cst_15 = arith.constant 0.000000e+00 : f32
      %21 = vector.broadcast %cst_15 : f32 to vector<8x8xf32>
      %c0_16 = arith.constant 0 : index
      %c0_17 = arith.constant 0 : index
      %22 = vector.load %arg4[%c0_16, %c0_17] : memref<8x8xf32, #tpu.memory_space<vmem>>, vector<8x8xf32>
      tpu.vector_store %arg4[%c0_16, %c0_17], %21 {strides = array<i32>} : memref<8x8xf32, #tpu.memory_space<vmem>>, vector<8x8xf32>,
      %cst_18 = arith.constant 0.000000e+00 : f32
      %23 = vector.broadcast %cst_18 : f32 to vector<1x1xf32>
      %c0_19 = arith.constant 0 : index
      %c0_20 = arith.constant 0 : index
      %24 = vector.load %arg5[%c0_19, %c0_20] : memref<1x1xf32, #tpu.memory_space<vmem>>, vector<1x1xf32>
      tpu.vector_store %arg5[%c0_19, %c0_20], %23 {strides = array<i32>} : memref<1x1xf32, #tpu.memory_space<vmem>>, vector<1x1xf32>,
    } else {
    }
    %c0 = arith.constant 0 : index
    %c0_1 = arith.constant 0 : index
    %3 = vector.load %arg1[%c0, %c0_1] : memref<8x256xf32, #tpu.memory_space<vmem>>, vector<8x256xf32>
    %c0_2 = arith.constant 0 : index
    %c0_3 = arith.constant 0 : index
    %4 = vector.load %arg2[%c0_2, %c0_3] : memref<8x256xf32, #tpu.memory_space<vmem>>, vector<8x256xf32>
    %c0_4 = arith.constant 0 : index
    %c0_5 = arith.constant 0 : index
    %5 = vector.load %arg4[%c0_4, %c0_5] : memref<8x8xf32, #tpu.memory_space<vmem>>, vector<8x8xf32>
    %cst = arith.constant dense<0.000000e+00> : vector<8x8xf32>
    %6 = tpu.matmul %3, %4, %cst {dimension_numbers = #tpu.dot_dimension_numbers<[1], [1], [0], [0], [0, 0, 1, 0], [], []>} : vector<8x256xf32>, vector<8x256xf32>, vector<8x8xf32> -> vector<8x8xf32>
    %7 = arith.addf %5, %6 : vector<8x8xf32>
    %c0_6 = arith.constant 0 : index
    %c0_7 = arith.constant 0 : index
    %8 = vector.load %arg4[%c0_6, %c0_7] : memref<8x8xf32, #tpu.memory_space<vmem>>, vector<8x8xf32>
    tpu.vector_store %arg4[%c0_6, %c0_7], %7 {strides = array<i32>} : memref<8x8xf32, #tpu.memory_space<vmem>>, vector<8x8xf32>,
    %c0_8 = arith.constant 0 : index
    %c0_9 = arith.constant 0 : index
    %9 = vector.load %arg5[%c0_8, %c0_9] : memref<1x1xf32, #tpu.memory_space<vmem>>, vector<1x1xf32>
    %10 = arith.mulf %3, %4 : vector<8x256xf32>
    %11 = vector.shape_cast %10 : vector<8x256xf32> to vector<1x8x256xf32>
    %cst_10 = arith.constant dense<0.000000e+00> : vector<1xf32>
    %12 = vector.multi_reduction <add>, %11, %cst_10 [1, 2] : vector<1x8x256xf32> to vector<1xf32>
    %13 = vector.shape_cast %12 : vector<1xf32> to vector<1x1x1xf32>
    %14 = vector.extract %13[0, 0, 0] : f32 from vector<1x1x1xf32>
    %15 = vector.broadcast %14 : f32 to vector<1x1xf32>
    %16 = arith.addf %9, %15 : vector<1x1xf32>
    %c0_11 = arith.constant 0 : index
    %c0_12 = arith.constant 0 : index
    %17 = vector.load %arg5[%c0_11, %c0_12] : memref<1x1xf32, #tpu.memory_space<vmem>>, vector<1x1xf32>
    tpu.vector_store %arg5[%c0_11, %c0_12], %16 {strides = array<i32>} : memref<1x1xf32, #tpu.memory_space<vmem>>, vector<1x1xf32>,
    %c0_i32_13 = arith.constant 0 : i32
    %18 = arith.cmpi eq, %arg0, %c0_i32_13 : i32
    %19 = arith.extui %18 : i1 to i32
    %c0_i32_14 = arith.constant 0 : i32
    %20 = arith.cmpi ne, %19, %c0_i32_14 : i32
    scf.if %20 {
      %c0_15 = arith.constant 0 : index
      %c0_16 = arith.constant 0 : index
      %21 = vector.load %arg4[%c0_15, %c0_16] : memref<8x8xf32, #tpu.memory_space<vmem>>, vector<8x8xf32>
      %cst_17 = arith.constant dense<0xFF800000> : vector<8xf32>
      %22 = vector.multi_reduction <maximumf>, %21, %cst_17 [1] : vector<8x8xf32> to vector<8xf32>
      %23 = vector.shape_cast %22 : vector<8xf32> to vector<8x1xf32>
      %cst_18 = arith.constant dense<0xFF800000> : vector<8xf32>
      %24 = vector.multi_reduction <maximumf>, %21, %cst_18 [0] : vector<8x8xf32> to vector<8xf32>
      %25 = vector.shape_cast %24 : vector<8xf32> to vector<1x8xf32>
      %26 = tpu.transpose %25, [1, 0] : vector<1x8xf32> -> vector<8x1xf32>
      %27 = arith.maximumf %23, %26 : vector<8x1xf32>
      %28 = vector.broadcast %27 : vector<8x1xf32> to vector<8x8xf32>
      %29 = arith.subf %21, %28 : vector<8x8xf32>
      %30 = math.exp %29 : vector<8x8xf32>
      %cst_19 = arith.constant dense<0.000000e+00> : vector<8xf32>
      %31 = vector.multi_reduction <add>, %30, %cst_19 [1] : vector<8x8xf32> to vector<8xf32>
      %32 = vector.shape_cast %31 : vector<8xf32> to vector<8x1xf32>
      %33 = tpu.transpose %27, [1, 0] : vector<8x1xf32> -> vector<1x8xf32>
      %34 = vector.broadcast %33 : vector<1x8xf32> to vector<8x8xf32>
      %35 = arith.subf %21, %34 : vector<8x8xf32>
      %36 = math.exp %35 : vector<8x8xf32>
      %cst_20 = arith.constant dense<0.000000e+00> : vector<8xf32>
      %37 = vector.multi_reduction <add>, %36, %cst_20 [0] : vector<8x8xf32> to vector<8xf32>
      %38 = vector.shape_cast %37 : vector<8xf32> to vector<1x8xf32>
      %39 = tpu.transpose %38, [1, 0] : vector<1x8xf32> -> vector<8x1xf32>
      %40 = arith.addf %32, %39 : vector<8x1xf32>
      %41 = math.log %40 : vector<8x1xf32>
      %42 = arith.addf %41, %27 : vector<8x1xf32>
      %43 = vector.shape_cast %42 : vector<8x1xf32> to vector<1x8x1xf32>
      %cst_21 = arith.constant dense<0.000000e+00> : vector<1xf32>
      %44 = vector.multi_reduction <add>, %43, %cst_21 [1, 2] : vector<1x8x1xf32> to vector<1xf32>
      %45 = vector.shape_cast %44 : vector<1xf32> to vector<1x1x1xf32>
      %46 = vector.extract %45[0, 0, 0] : f32 from vector<1x1x1xf32>
      %47 = vector.broadcast %46 : f32 to vector<1x1xf32>
      %cst_22 = arith.constant 8.000000e+00 : f32
      %48 = vector.broadcast %cst_22 : f32 to vector<1x1xf32>
      %49 = arith.divf %47, %48 : vector<1x1xf32>
      %c0_23 = arith.constant 0 : index
      %c0_24 = arith.constant 0 : index
      %50 = vector.load %arg5[%c0_23, %c0_24] : memref<1x1xf32, #tpu.memory_space<vmem>>, vector<1x1xf32>
      %cst_25 = arith.constant 1.250000e-01 : f32
      %51 = vector.broadcast %cst_25 : f32 to vector<1x1xf32>
      %52 = arith.mulf %50, %51 : vector<1x1xf32>
      %53 = arith.subf %49, %52 : vector<1x1xf32>
      %c0_26 = arith.constant 0 : index
      %c0_27 = arith.constant 0 : index
      %54 = vector.load %arg3[%c0_26, %c0_27] : memref<1x1xf32, #tpu.memory_space<vmem>>, vector<1x1xf32>
      tpu.vector_store %arg3[%c0_26, %c0_27], %53 {strides = array<i32>} : memref<1x1xf32, #tpu.memory_space<vmem>>, vector<1x1xf32>,
    } else {
    }
    return
  }
  func.func @transform_0(%arg0: i32) -> (i32, i32) {
    %c0_i32 = arith.constant 0 : i32
    %c0_i32_0 = arith.constant 0 : i32
    return %c0_i32, %arg0 : i32, i32
  }
  func.func @transform_1(%arg0: i32) -> (i32, i32) {
    %c0_i32 = arith.constant 0 : i32
    %c0_i32_0 = arith.constant 0 : i32
    return %c0_i32, %arg0 : i32, i32
  }
  func.func @transform_2(%arg0: i32) -> (i32, i32) {
    %c0_i32 = arith.constant 0 : i32
    %c0_i32_0 = arith.constant 0 : i32
    %c0_i32_1 = arith.constant 0 : i32
    return %c0_i32, %c0_i32_0 : i32, i32
  }
}

</mosaic_0001>

<bundles_post_ra>
// kernel: tpu_custom_call.1
= control target key start
LH: loop header
LB: loop body
LE: loop exit
PB: predicated region body
PF: predicated region fallthrough
CT: control target
= control target key end

     0   :  { %7 = vsyncpa [#allocation5], 0  ;;  %s429_s0 = inlined_call_operand.hbm [shape: f32[8,256], index: 0, kind: input, shape index: {}]   ;;  %s430_s1 = inlined_call_operand.hbm [shape: f32[8,256], index: 1, kind: input, shape index: {}]   ;;  %s431_s2 = inlined_call_operand.hbm [shape: f32[1,1], index: 2, kind: output, shape index: {}]  }
   0x1   :  { %8 = vsyncpa [#allocation8], 0 }
   0x2   :  { %9 = vsyncpa [#allocation6], 0  ;;  %s15_s11 = sshll.u32 %s429_s0, 4  ;;  %s389_s12 = smov [#allocation4]   ;;  %s16_s11 = int_to_ptr.hbm [resolvable:$true] %s15_s11 }
   0x3   :  { %s17_s13 = sshll.u32 %s389_s12, 4  ;;  %s26_s16 = sshll.u32 %s430_s1, 4  ;;  %s18_s13 = int_to_ptr.vmem [resolvable:$true] %s17_s13  ;;  %s27_s16 = int_to_ptr.hbm [resolvable:$true] %s26_s16 }
   0x4   :  { %20 = dma.hbm_to_vmem [thread:$0]  %s16_s11, 256, %s18_s13, [#allocation5]  }
   0x5   :  { %s390_s17 = smov [#allocation7]  }
   0x6   :  { %s28_s18 = sshll.u32 %s390_s17, 4  ;;  %s29_s18 = int_to_ptr.vmem [resolvable:$true] %s28_s18 }
   0x7   :  { %31 = dma.hbm_to_vmem [thread:$0]  %s27_s16, 256, %s29_s18, [#allocation8]  }
   0x8   :  { %383 = dma.done.wait [#allocation5], 256  }
   0x9   :  { %384 = vsyncadd [#allocation5], 4294967040 }
   0xa   :  { %385 = dma.done.wait [#allocation8], 256  }
   0xb   :  { %386 = vsyncadd [#allocation8], 4294967040  ;;  %v50_v0 = vld [vmem:[#allocation7] sm:$0xff]  ;;  %v51_v1 = vld [vmem:[#allocation7 + $0x8] sm:$0xff]  ;;  %vm44_vm0 = vcmask 64512   ;;  %v391_v6 = vmov 0.0  }
   0xc   :  { %v48_v2 = vld [vmem:[#allocation4] sm:$0xff]  ;;  %68 = vmatpush.xpose.msra.mxu0 %v50_v0  ;;  %88 = vmatpush.xpose.msra.mxu1 %v51_v1  ;;  %v49_v4 = vld [vmem:[#allocation4 + $0x8] sm:$0xff]  ;;  %45 = vst.msk [vmem:[#allocation2] sm:$0xff] %vm44_vm0, %v391_v6  ;;  %v392_v20 = vmov 0   ;;  %vm249_vm1 = vcmask 7168   ;;  %vm46_vm2 = vcmask 0  }
   0xd   :  { %v97_v3 = vmul.f32 %v50_v0, %v48_v2  ;;  %v98_v5 = vmul.f32 %v51_v1, %v49_v4  ;;  %301 = vset.pattern.permute.xlu1 %v392_v20  ;;  %47 = vst.msk [vmem:[#allocation3] sm:$0x1] %vm46_vm2, %v391_v6  ;;  %s394_s19 = smov [#allocation9]   ;;  %s280_s23 = sshll.u32 %s431_s2, 4  ;;  %s281_s23 = int_to_ptr.hbm [resolvable:$true] %s280_s23 }
   0xe   :  { %s278_s20 = sshll.u32 %s394_s19, 4  ;;  %s279_s20 = int_to_ptr.vmem [resolvable:$true] %s278_s20 }
   0xf   :  { %69 = vmatmul.f32.vlgmr.msra.gmra.mxu0 %v48_v2  ;;  %89 = vmatmul.f32.vlgmr.msra.gmra.mxu1 %v49_v4  ;;  %v99_v29 = vadd.f32 %v98_v5, %v97_v3  ;;  %v393_v2 = vmov 8.0  }
  0x13   :  { %v52_v8 = vld [vmem:[#allocation2] sm:$0xff] }
  0x14   :  { %v96_v57 = vld [vmem:[#allocation3] sm:$0x1] }
  0x8c   :  { %v70_v7 = vpop.f32.mrf.mxu0  ;;  %v90_v9 = vpop.f32.mrf.mxu1 }
  0x8d   :  { %v91_v10 = vadd.f32 %v90_v9, %v70_v7 }
  0x8f   :  { %v93_v11 = vadd.f32 %v91_v10, %v52_v8 }
  0x91   :  { %95 = vst.msk [vmem:[#allocation2] sm:$0xff] %vm44_vm0, %v93_v11 }
  0x98   :  { %v116_v12 = vld [vmem:[#allocation2] sm:$0xff] }
  0x99   :  { %v117_v13 = vsel %vm44_vm0, %v116_v12, -inf }
  0x9a   :  { %118 = vmax.xlane.f32.xlu0 %v117_v13  ;;  %v120_v14 = vrot.slane %v117_v13, 4 }
  0x9c   :  { %v121_v15 = vmax.f32 %v117_v13, %v120_v14 }
  0x9e   :  { %v122_v16 = vrot.slane %v121_v15, 2 }
  0xa0   :  { %v123_v17 = vmax.f32 %v121_v15, %v122_v16 }
  0xa2   :  { %v124_v18 = vrot.slane %v123_v17, 1 }
  0xa4   :  { %v125_v19 = vmax.f32 %v123_v17, %v124_v18 }
  0xc3   :  { %126 = vxpose.xlu0.b32.start.end [1/1] (short) (narrow) %v125_v19, 8 }
 0x10d   :  { %v119_v21 = vpop.xlane.xlu0 %118 }
 0x12a   :  { %302 = vset.pattern.permute.xlu0 %v392_v20 }
 0x134   :  { %100 = vadd.xlane.f32.xlu0 %v99_v29 }
 0x167   :  { %v142_v22 = vpop.trf.xlu0 }
 0x168   :  { %v158_v23 = vmax.f32 %v119_v21, %v142_v22 }
 0x16a   :  { %161 = vperm.xlu1 %301, %v158_v23  }
 0x19f   :  { %170 = vxpose.xlu1.b32.start.end [1/1] (short) (narrow) %v158_v23, 8 }
 0x1a7   :  { %v101_v42 = vpop.xlane.xlu0 %100 }
 0x1a8   :  { %v102_v43 = vrot.slane %v101_v42, 4 }
 0x1aa   :  { %v103_v44 = vadd.f32 %v102_v43, %v101_v42 }
 0x1ac   :  { %v104_v45 = vrot.slane %v103_v44, 2 }
 0x1ae   :  { %v105_v46 = vadd.f32 %v104_v45, %v103_v44 }
 0x1b0   :  { %v106_v48 = vrot.slane %v105_v46, 1 }
 0x1b2   :  { %v107_v49 = vadd.f32 %v106_v48, %v105_v46 }
 0x1b4   :  { %291 = vpush %v107_v49 }
 0x1dc   :  { %v162_v24 = vpop.permute.xlu1 %161 }
 0x1dd   :  { %v164_v25 = vsub.f32 %v116_v12, %v162_v24 }
 0x1df   :  { %v165_v26 = vmul.f32 1.442695, %v164_v25 }
 0x1e1   :  { %303 = vpow2.f32 %v165_v26 }
 0x1e5   :  { %s292_s0 = spop %291 }
 0x1e6   :  { %v109_v56 = vstv %s292_s0 }
 0x1e7   :  { %v304_v27 = vpop.eup %303  ;;  %v110_v58 = vadd.f32 %v109_v56, %v96_v57 }
 0x1e8   :  { %v167_v28 = vsel %vm44_vm0, %v304_v27, 0.0 }
 0x1e9   :  { %168 = vadd.xlane.f32.xlu2 %v167_v28  ;;  %112 = vst.msk [vmem:[#allocation3] sm:$0x1] %vm46_vm2, %v110_v58 }
 0x1f0   :  { %v269_v9 = vld [vmem:[#allocation3] sm:$0x1] }
 0x243   :  { %v186_v30 = vpop.trf.xlu1 }
 0x244   :  { %v202_v31 = vperm.slane %v186_v30, 0 }
 0x246   :  { %v203_v32 = vsub.f32 %v116_v12, %v202_v31  ;;  %v270_v12 = vmul.f32 0.125, %v269_v9 }
 0x248   :  { %v204_v33 = vmul.f32 1.442695, %v203_v32 }
 0x24a   :  { %305 = vpow2.f32 %v204_v33 }
 0x250   :  { %v306_v34 = vpop.eup %305 }
 0x251   :  { %v206_v35 = vsel %vm44_vm0, %v306_v34, 0.0 }
 0x252   :  { %v207_v36 = vrot.slane %v206_v35, 4 }
 0x254   :  { %v208_v37 = vadd.f32 %v207_v36, %v206_v35 }
 0x256   :  { %v209_v38 = vrot.slane %v208_v37, 2 }
 0x258   :  { %v210_v39 = vadd.f32 %v209_v38, %v208_v37 }
 0x25a   :  { %v211_v40 = vrot.slane %v210_v39, 1 }
 0x25c   :  { %v212_v41 = vadd.f32 %v211_v40, %v210_v39  ;;  %v169_v47 = vpop.xlane.xlu2 %168 }
 0x25e   :  { %213 = vxpose.xlu2.b32.start.end [1/1] (short) (narrow) %v212_v41, 8 }
 0x2f7   :  { %v229_v50 = vpop.trf.xlu2 }
 0x2f8   :  { %v245_v51 = vadd.f32 %v229_v50, %v169_v47 }
 0x2fa   :  { %307 = vlog2.f32 %v245_v51 }
 0x2fb   :  { %309 = vrcp.f32 %v393_v2 }
 0x300   :  { %v308_v52 = vpop.eup %307 }
 0x301   :  { %v247_v53 = vmul.f32 0.6931472, %v308_v52  ;;  %v310_v3 = vpop.eup %309 }
 0x302   :  { %v262_v4 = vmul.f32 8.0, %v310_v3  ;;  %vm266_vm3 = vweird.f32 %v310_v3 }
 0x303   :  { %v248_v54 = vadd.f32 %v247_v53, %v158_v23 }
 0x304   :  { %v263_v5 = vsub.f32 1.0, %v262_v4 }
 0x305   :  { %v250_v55 = vsel %vm249_vm1, %v248_v54, 0.0 }
 0x306   :  { %251 = vadd.xlane.f32.xlu2 %v250_v55  ;;  %v264_v6 = vmul.f32 %v310_v3, %v263_v5 }
 0x308   :  { %v265_v7 = vadd.f32 %v310_v3, %v264_v6 }
 0x30a   :  { %v267_v8 = vsel %vm266_vm3, %v310_v3, %v265_v7 }
 0x379   :  { %v252_v59 = vpop.xlane.xlu2 %251 }
 0x37a   :  { %v253_v60 = vrot.slane %v252_v59, 4 }
 0x37c   :  { %v254_v61 = vadd.f32 %v253_v60, %v252_v59 }
 0x37e   :  { %v255_v62 = vrot.slane %v254_v61, 2 }
 0x380   :  { %v256_v63 = vadd.f32 %v255_v62, %v254_v61 }
 0x382   :  { %v257_v0 = vrot.slane %v256_v63, 1 }
 0x384   :  { %v258_v1 = vadd.f32 %v257_v0, %v256_v63 }
 0x386   :  { %293 = vpush %v258_v1 }
 0x3b7   :  { %s294_s1 = spop %293 }
 0x3b8   :  { %v260_v10 = vstv %s294_s1 }
 0x3b9   :  { %v268_v11 = vmul.f32 %v267_v8, %v260_v10 }
 0x3bb   :  { %v271_v13 = vsub.f32 %v268_v11, %v270_v12 }
 0x3bd   :  { %272 = vst.msk [vmem:[#allocation9] sm:$0x1] %vm46_vm2, %v271_v13 }
 0x3be   :  { %283 = dma.vmem_to_hbm [thread:$0]  %s279_s20, 16, %s281_s23, [#allocation6]  }
 0x3bf   :  { %387 = dma.done.wait [#allocation6], 16  }
 0x3c0   :  { %388 = vsyncadd [#allocation6], 4294967280 }
 0x3c1   :  { %288 = vsyncpa [#allocation5], 1 }
 0x3c2   :  { %289 = vsyncpa [#allocation8], 1 }
 0x3c3   :  { %290 = vsyncpa [#allocation6], 1 }

</bundles_post_ra>
